<compile_context>
chip_gen: v5e
topology: v5e:2x2
jax: 0.10.0
libtpu: 0.0.40
codegen_flags: <defaults>
</compile_context>

<pallas_src>
import functools
import math

import jax
import jax.numpy as jnp
from jax.experimental import pallas as pl
from jax.experimental.pallas import tpu as pltpu

GAMMA = 0.5                 # module default; kernel specializes gamma == 0.5 via sqrt
EPS = 1e-7
LOG_EPS = math.log(EPS)
LANE = 128
SUBLANE = 8
MAX_TILE_ROWS = 2048        # 2048*128*4B = 1 MiB per f32 input block
CHUNK_ROWS = 32             # inner compute chunk (4 vregs per live f32 array)


def _cdiv(a, b):
    return -(-a // b)


def _round_up(a, b):
    return _cdiv(a, b) * b


def _joint_focal_partial_kernel(p_ref, t_ref, out_ref, acc_ref, *,
                                tile_rows, chunk_rows, tiles_per_split,
                                num_real_tiles, num_padded_tiles,
                                rows_full, lanes_rem, ragged):
    c = pl.program_id(0)                 # core / split index         (CORE_PARALLEL on v7x)
    i = pl.program_id(1)                 # tile index within a split  ("arbitrary")
    g = c * tiles_per_split + i          # logical (unclamped) global tile index

    @pl.when(i == 0)
    def _init():
        acc_ref[...] = jnp.zeros_like(acc_ref)

    num_chunks = tile_rows // chunk_rows

    def fold(v):
        # (chunk_rows, 128) -> (8, 128): element-wise VPU adds over the leading axis only.
        return v.reshape(chunk_rows // SUBLANE, SUBLANE, LANE).sum(axis=0)

    def chunk_sums(k, carry, masked):
        fa, qa, ta, qta = carry
        r0 = pl.multiple_of(k * chunk_rows, chunk_rows)
        x = p_ref[pl.ds(r0, chunk_rows), :].astype(jnp.float32)
        t = t_ref[pl.ds(r0, chunk_rows), :].astype(jnp.float32)

        # --- 3-transcendental focal integrand (gamma == 0.5) ---
        #   s = exp(-x/2); e = exp(-x); r = rsqrt(1+e)
        #   q = sigmoid(x) = r*r ; sqrt(q) = r ; sqrt(1-q) = s*r
        #   log(q) = -log(1+e) ; log(1-q) = -x - log(1+e)
        xc = jnp.clip(x, -50.0, 50.0)          # keep exp / rsqrt finite in f32
        s = jnp.exp(-0.5 * xc)                 # EUP 1
        e = s * s
        one_pe = 1.0 + e
        r = jax.lax.rsqrt(one_pe)              # EUP 2
        q = r * r
        big_l = jnp.log(one_pe)                # EUP 3
        log_q = jnp.maximum(-big_l, LOG_EPS)           # parity with log(q + eps)
        log_1mq = jnp.maximum(-xc - big_l, LOG_EPS)    # parity with log(1 - q + eps)
        f = t * log_q * (s * r) + (1.0 - t) * log_1mq * r
        qt = q * t

        if masked:
            # Row-index based mask (no flat-index int32 overflow); select-based so
            # NaN/Inf garbage in out-of-range edge-block rows never pollutes the sums.
            row = jax.lax.broadcasted_iota(jnp.int32, (chunk_rows, LANE), 0)
            grow = g * tile_rows + r0 + row
            keep = grow < rows_full
            if lanes_rem:
                lane = jax.lax.broadcasted_iota(jnp.int32, (chunk_rows, LANE), 1)
                keep = keep | ((grow == rows_full) & (lane < lanes_rem))
            f = jnp.where(keep, f, 0.0)
            q = jnp.where(keep, q, 0.0)
            t = jnp.where(keep, t, 0.0)
            qt = jnp.where(keep, qt, 0.0)

        return (fa + fold(f), qa + fold(q), ta + fold(t), qta + fold(qt))

    def accumulate(masked):
        zero = jnp.zeros((SUBLANE, LANE), jnp.float32)
        init = (zero, zero, zero, zero)
        fa, qa, ta, qta = jax.lax.fori_loop(
            0, num_chunks, lambda k, carry: chunk_sums(k, carry, masked), init)
        acc_ref[0] += fa
        acc_ref[1] += qa
        acc_ref[2] += ta
        acc_ref[3] += qta

    if ragged:
        last_real = num_real_tiles - 1

        @pl.when(g < last_real)
        def _full_tiles():
            accumulate(False)

        @pl.when(g == last_real)
        def _last_tile():
            accumulate(True)
        # g > last_real: padded/empty tile -> contributes nothing.
    else:
        if num_padded_tiles > num_real_tiles:
            @pl.when(g < num_real_tiles)
            def _real_tiles():
                accumulate(False)
        else:
            accumulate(False)

    @pl.when(i == pl.num_programs(1) - 1)
    def _finalize():
        out_ref[0] = acc_ref[...]


def _device_core_split():
    """(num_splits, leading-axis semantics): engage both TensorCores on v7x only."""
    try:
        kind = jax.devices()[0].device_kind.lower()
    except Exception:
        kind = ""
    if "v7" in kind or "tpu7" in kind:
        return 2, pltpu.CORE_PARALLEL
    return 1, pltpu.ARBITRARY            # single-TC v5e / v6e: split is pure overhead


def _joint_focal_loss_impl(y_pred, y_true):
    assert y_pred.shape == y_true.shape
    assert GAMMA == 0.5, "kernel specializes gamma == 0.5 (sqrt instead of pow)"
    n = int(y_pred.size)
    assert n > 0

    rows_needed = _cdiv(n, LANE)
    if rows_needed <= MAX_TILE_ROWS:
        # Tiny input: single block; round rows up to a sublane multiple.
        rows_padded = _round_up(rows_needed, SUBLANE)
        tile_rows = rows_padded
    else:
        # Large input: zero-copy reshape when n % 128 == 0; the ragged last block is
        # handled in-kernel, so no full-array jnp.pad copy is needed.
        rows_padded = rows_needed
        tile_rows = MAX_TILE_ROWS
    pad_elems = rows_padded * LANE - n

    num_real_tiles = _cdiv(rows_padded, tile_rows)
    num_splits, axis0_sem = _device_core_split()
    if num_real_tiles < 2:
        num_splits, axis0_sem = 1, pltpu.ARBITRARY
    tiles_per_split = _cdiv(num_real_tiles, num_splits)
    num_padded_tiles = num_splits * tiles_per_split

    ragged = (pad_elems > 0) or (rows_padded % tile_rows != 0)
    chunk_rows = next(cr for cr in (CHUNK_ROWS, 16, 8, tile_rows) if tile_rows % cr == 0)

    def _as2d(x):
        flat = x.reshape(-1)
        if pad_elems:
            # TODO(synk): a sub-128 remainder forces this one-off pad copy; every
            # 128-aligned size streams with zero extra HBM traffic.
            flat = jnp.pad(flat, (0, pad_elems))
        return flat.reshape(rows_padded, LANE)

    p2d = _as2d(y_pred)    # native dtype (f32/bf16/...) in HBM; f32 upcast happens in VMEM
    t2d = _as2d(y_true)

    kernel = functools.partial(
        _joint_focal_partial_kernel,
        tile_rows=tile_rows, chunk_rows=chunk_rows,
        tiles_per_split=tiles_per_split,
        num_real_tiles=num_real_tiles, num_padded_tiles=num_padded_tiles,
        rows_full=n // LANE, lanes_rem=n % LANE, ragged=ragged)

    def in_map(c, i):
        return (jnp.minimum(c * tiles_per_split + i, num_real_tiles - 1), 0)

    itemsz = jnp.dtype(p2d.dtype).itemsize + jnp.dtype(t2d.dtype).itemsize
    # 2 pipeline buffers per input + scratch/intermediates/output headroom,
    # capped comfortably under v7x's 64 MiB physical VMEM.
    vmem_limit = int(max(8 << 20, min(48 << 20, 2 * tile_rows * LANE * itemsz + (6 << 20))))

    partials = pl.pallas_call(
        kernel,
        out_shape=jax.ShapeDtypeStruct((num_splits, 4, SUBLANE, LANE), jnp.float32),
        grid_spec=pltpu.PrefetchScalarGridSpec(
            num_scalar_prefetch=0,
            grid=(num_splits, tiles_per_split),
            in_specs=[
                pl.BlockSpec((tile_rows, LANE), in_map),
                pl.BlockSpec((tile_rows, LANE), in_map),
            ],
            out_specs=pl.BlockSpec((1, 4, SUBLANE, LANE), lambda c, i: (c, 0, 0, 0)),
            scratch_shapes=[pltpu.VMEM((4, SUBLANE, LANE), jnp.float32)],
        ),
        compiler_params=pltpu.CompilerParams(
            dimension_semantics=(axis0_sem, pltpu.ARBITRARY),
            vmem_limit_bytes=vmem_limit,
        ),
        cost_estimate=pl.CostEstimate(
            flops=25 * n,
            transcendentals=3 * n,
            bytes_accessed=n * itemsz + num_splits * 4 * SUBLANE * LANE * 4,
        ),
    )(p2d, t2d)

    # Tiny epilogue: reduce a few KiB of partial sums and apply the loss formula.
    sums = jnp.sum(partials, axis=(0, 2, 3))          # (4,)
    sum_f, sum_q, sum_t, sum_qt = sums[0], sums[1], sums[2], sums[3]

    focal = -(sum_f / n)
    inter = sum_qt
    union = sum_q + sum_t - inter
    # TODO(synk): IoULoss source was not provided; standard soft (sigmoid) IoU assumed.
    iou = 1.0 - (inter + EPS) / (union + EPS)
    return 0.66 * iou + 0.33 * focal


joint_focal_loss = jax.jit(_joint_focal_loss_impl)


def _reference(y_pred, y_true):
    """Pure-JAX reference mirroring the PyTorch module."""
    q = jax.nn.sigmoid(y_pred.astype(jnp.float32))
    t = y_true.astype(jnp.float32)
    f = (t * jnp.log(q + EPS) * (1.0 - q + EPS) ** GAMMA
         + (1.0 - t) * jnp.log(1.0 - q + EPS) * (q + EPS) ** GAMMA)
    focal = -jnp.mean(f)
    inter = jnp.sum(q * t)
    union = jnp.sum(q) + jnp.sum(t) - inter
    iou = 1.0 - (inter + EPS) / (union + EPS)
    return 0.66 * iou + 0.33 * focal


if __name__ == "__main__":
    def _check(shape, k1, k2, tol=5e-5):
        y_pred = jax.random.normal(k1, shape, dtype=jnp.float32)
        y_true = (jax.random.uniform(k2, shape) > 0.5).astype(jnp.float32)
        out = jax.block_until_ready(joint_focal_loss(y_pred, y_true))
        ref = jax.block_until_ready(_reference(y_pred, y_true))
        assert jnp.isfinite(out), shape
        assert abs(float(out) - float(ref)) < tol, (shape, float(out), float(ref))

    key = jax.random.PRNGKey(0)
    keys = jax.random.split(key, 6)
    # Primary small shape (NCHW: batch=2, channels=4, spatial=16x16), lane-aligned.
    _check((2, 4, 16, 16), keys[0], keys[1])
    # Unaligned size: exercises the tiny-pad + lane-remainder masked path.
    _check((2, 3, 17, 19), keys[2], keys[3])
    # Multi-tile streaming with a ragged (edge-block) last tile, no pad copy.
    _check((4, 8, 96, 128), keys[4], keys[5])

    print("KERNEL_OK")
</pallas_src>

<mosaic_0001>
module attributes {stable_mosaic.version = 11 : i64} {
  func.func @_joint_focal_partial_kernel(%arg0: i32, %arg1: i32, %arg2: memref<16x128xf32, #tpu.memory_space<vmem>>, %arg3: memref<16x128xf32, #tpu.memory_space<vmem>>, %arg4: memref<1x4x8x128xf32, #tpu.memory_space<vmem>>, %arg5: memref<4x8x128xf32, #tpu.memory_space<vmem>>) attributes {dimension_semantics = [#tpu.dimension_semantics<arbitrary>, #tpu.dimension_semantics<arbitrary>], iteration_bounds = array<i64: 1, 1>, scalar_prefetch = 0 : i64, scratch_operands = 1 : i64, tpu.core_type = #tpu.core_type<tc>, window_params = [{transform_indices = @transform_0, window_bounds = array<i64: 16, 128>}, {transform_indices = @transform_1, window_bounds = array<i64: 16, 128>}, {transform_indices = @transform_2, window_bounds = array<i64: 1, 4, 8, 128>}]} {
    %c0_i32 = arith.constant 0 : i32
    %0 = arith.cmpi eq, %arg1, %c0_i32 : i32
    %1 = arith.extui %0 : i1 to i32
    %c0_i32_0 = arith.constant 0 : i32
    %2 = arith.cmpi ne, %1, %c0_i32_0 : i32
    scf.if %2 {
      %cst_39 = arith.constant 0.000000e+00 : f32
      %80 = vector.broadcast %cst_39 : f32 to vector<4x8x128xf32>
      %c0_40 = arith.constant 0 : index
      %c0_41 = arith.constant 0 : index
      %c0_42 = arith.constant 0 : index
      %81 = vector.load %arg5[%c0_40, %c0_41, %c0_42] : memref<4x8x128xf32, #tpu.memory_space<vmem>>, vector<4x8x128xf32>
      tpu.vector_store %arg5[%c0_40, %c0_41, %c0_42], %80 {strides = array<i32>} : memref<4x8x128xf32, #tpu.memory_space<vmem>>, vector<4x8x128xf32>,
    } else {
    }
    %cst = arith.constant 0.000000e+00 : f32
    %3 = vector.broadcast %cst : f32 to vector<8x128xf32>
    %c0_i32_1 = arith.constant 0 : i32
    %c16_i32 = arith.constant 16 : i32
    %4 = arith.muli %c0_i32_1, %c16_i32 : i32
    %5 = tpu.assume_multiple %4, 16 : i32
    %6 = arith.index_cast %5 : i32 to index
    %c0 = arith.constant 0 : index
    %7 = vector.load %arg2[%6, %c0] : memref<16x128xf32, #tpu.memory_space<vmem>>, vector<16x128xf32>
    %8 = arith.index_cast %5 : i32 to index
    %c0_2 = arith.constant 0 : index
    %9 = vector.load %arg3[%8, %c0_2] : memref<16x128xf32, #tpu.memory_space<vmem>>, vector<16x128xf32>
    %cst_3 = arith.constant -5.000000e+01 : f32
    %cst_4 = arith.constant 5.000000e+01 : f32
    %10 = vector.broadcast %cst_3 : f32 to vector<16x128xf32>
    %11 = arith.maximumf %10, %7 : vector<16x128xf32>
    %12 = vector.broadcast %cst_4 : f32 to vector<16x128xf32>
    %13 = arith.minimumf %12, %11 : vector<16x128xf32>
    %cst_5 = arith.constant -5.000000e-01 : f32
    %14 = vector.broadcast %cst_5 : f32 to vector<16x128xf32>
    %15 = arith.mulf %14, %13 : vector<16x128xf32>
    %16 = math.exp %15 : vector<16x128xf32>
    %17 = arith.mulf %16, %16 : vector<16x128xf32>
    %cst_6 = arith.constant 1.000000e+00 : f32
    %18 = vector.broadcast %cst_6 : f32 to vector<16x128xf32>
    %19 = arith.addf %18, %17 : vector<16x128xf32>
    %20 = math.rsqrt %19 : vector<16x128xf32>
    %21 = arith.mulf %20, %20 : vector<16x128xf32>
    %22 = math.log %19 : vector<16x128xf32>
    %cst_7 = arith.constant 0.000000e+00 : f32
    %23 = vector.broadcast %cst_7 : f32 to vector<16x128xf32>
    %24 = arith.subf %23, %22 : vector<16x128xf32>
    %cst_8 = arith.constant -16.1180954 : f32
    %25 = vector.broadcast %cst_8 : f32 to vector<16x128xf32>
    %26 = arith.maximumf %24, %25 : vector<16x128xf32>
    %cst_9 = arith.constant 0.000000e+00 : f32
    %27 = vector.broadcast %cst_9 : f32 to vector<16x128xf32>
    %28 = arith.subf %27, %13 : vector<16x128xf32>
    %29 = arith.subf %28, %22 : vector<16x128xf32>
    %cst_10 = arith.constant -16.1180954 : f32
    %30 = vector.broadcast %cst_10 : f32 to vector<16x128xf32>
    %31 = arith.maximumf %29, %30 : vector<16x128xf32>
    %32 = arith.mulf %9, %26 : vector<16x128xf32>
    %33 = arith.mulf %16, %20 : vector<16x128xf32>
    %34 = arith.mulf %32, %33 : vector<16x128xf32>
    %cst_11 = arith.constant 1.000000e+00 : f32
    %35 = vector.broadcast %cst_11 : f32 to vector<16x128xf32>
    %36 = arith.subf %35, %9 : vector<16x128xf32>
    %37 = arith.mulf %36, %31 : vector<16x128xf32>
    %38 = arith.mulf %37, %20 : vector<16x128xf32>
    %39 = arith.addf %34, %38 : vector<16x128xf32>
    %40 = arith.mulf %21, %9 : vector<16x128xf32>
    %41 = vector.shape_cast %39 : vector<16x128xf32> to vector<2x8x128xf32>
    %cst_12 = arith.constant dense<0.000000e+00> : vector<8x128xf32>
    %42 = vector.multi_reduction <add>, %41, %cst_12 [0] : vector<2x8x128xf32> to vector<8x128xf32>
    %43 = arith.addf %3, %42 : vector<8x128xf32>
    %44 = vector.shape_cast %21 : vector<16x128xf32> to vector<2x8x128xf32>
    %cst_13 = arith.constant dense<0.000000e+00> : vector<8x128xf32>
    %45 = vector.multi_reduction <add>, %44, %cst_13 [0] : vector<2x8x128xf32> to vector<8x128xf32>
    %46 = arith.addf %3, %45 : vector<8x128xf32>
    %47 = vector.shape_cast %9 : vector<16x128xf32> to vector<2x8x128xf32>
    %cst_14 = arith.constant dense<0.000000e+00> : vector<8x128xf32>
    %48 = vector.multi_reduction <add>, %47, %cst_14 [0] : vector<2x8x128xf32> to vector<8x128xf32>
    %49 = arith.addf %3, %48 : vector<8x128xf32>
    %50 = vector.shape_cast %40 : vector<16x128xf32> to vector<2x8x128xf32>
    %cst_15 = arith.constant dense<0.000000e+00> : vector<8x128xf32>
    %51 = vector.multi_reduction <add>, %50, %cst_15 [0] : vector<2x8x128xf32> to vector<8x128xf32>
    %52 = arith.addf %3, %51 : vector<8x128xf32>
    %c1_i32 = arith.constant 1 : i32
    %c0_16 = arith.constant 0 : index
    %c0_17 = arith.constant 0 : index
    %c0_18 = arith.constant 0 : index
    %53 = vector.load %arg5[%c0_16, %c0_17, %c0_18] : memref<4x8x128xf32, #tpu.memory_space<vmem>>, vector<1x8x128xf32>
    %54 = vector.shape_cast %53 : vector<1x8x128xf32> to vector<8x128xf32>
    %55 = arith.addf %54, %43 : vector<8x128xf32>
    %c0_19 = arith.constant 0 : index
    %c0_20 = arith.constant 0 : index
    %c0_21 = arith.constant 0 : index
    %56 = vector.load %arg5[%c0_19, %c0_20, %c0_21] : memref<4x8x128xf32, #tpu.memory_space<vmem>>, vector<1x8x128xf32>
    %57 = vector.shape_cast %56 : vector<1x8x128xf32> to vector<8x128xf32>
    %58 = vector.shape_cast %55 : vector<8x128xf32> to vector<1x8x128xf32>
    tpu.vector_store %arg5[%c0_19, %c0_20, %c0_21], %58 {strides = array<i32>} : memref<4x8x128xf32, #tpu.memory_space<vmem>>, vector<1x8x128xf32>,
    %c1 = arith.constant 1 : index
    %c0_22 = arith.constant 0 : index
    %c0_23 = arith.constant 0 : index
    %59 = vector.load %arg5[%c1, %c0_22, %c0_23] : memref<4x8x128xf32, #tpu.memory_space<vmem>>, vector<1x8x128xf32>
    %60 = vector.shape_cast %59 : vector<1x8x128xf32> to vector<8x128xf32>
    %61 = arith.addf %60, %46 : vector<8x128xf32>
    %c1_24 = arith.constant 1 : index
    %c0_25 = arith.constant 0 : index
    %c0_26 = arith.constant 0 : index
    %62 = vector.load %arg5[%c1_24, %c0_25, %c0_26] : memref<4x8x128xf32, #tpu.memory_space<vmem>>, vector<1x8x128xf32>
    %63 = vector.shape_cast %62 : vector<1x8x128xf32> to vector<8x128xf32>
    %64 = vector.shape_cast %61 : vector<8x128xf32> to vector<1x8x128xf32>
    tpu.vector_store %arg5[%c1_24, %c0_25, %c0_26], %64 {strides = array<i32>} : memref<4x8x128xf32, #tpu.memory_space<vmem>>, vector<1x8x128xf32>,
    %c2 = arith.constant 2 : index
    %c0_27 = arith.constant 0 : index
    %c0_28 = arith.constant 0 : index
    %65 = vector.load %arg5[%c2, %c0_27, %c0_28] : memref<4x8x128xf32, #tpu.memory_space<vmem>>, vector<1x8x128xf32>
    %66 = vector.shape_cast %65 : vector<1x8x128xf32> to vector<8x128xf32>
    %67 = arith.addf %66, %49 : vector<8x128xf32>
    %c2_29 = arith.constant 2 : index
    %c0_30 = arith.constant 0 : index
    %c0_31 = arith.constant 0 : index
    %68 = vector.load %arg5[%c2_29, %c0_30, %c0_31] : memref<4x8x128xf32, #tpu.memory_space<vmem>>, vector<1x8x128xf32>
    %69 = vector.shape_cast %68 : vector<1x8x128xf32> to vector<8x128xf32>
    %70 = vector.shape_cast %67 : vector<8x128xf32> to vector<1x8x128xf32>
    tpu.vector_store %arg5[%c2_29, %c0_30, %c0_31], %70 {strides = array<i32>} : memref<4x8x128xf32, #tpu.memory_space<vmem>>, vector<1x8x128xf32>,
    %c3 = arith.constant 3 : index
    %c0_32 = arith.constant 0 : index
    %c0_33 = arith.constant 0 : index
    %71 = vector.load %arg5[%c3, %c0_32, %c0_33] : memref<4x8x128xf32, #tpu.memory_space<vmem>>, vector<1x8x128xf32>
    %72 = vector.shape_cast %71 : vector<1x8x128xf32> to vector<8x128xf32>
    %73 = arith.addf %72, %52 : vector<8x128xf32>
    %c3_34 = arith.constant 3 : index
    %c0_35 = arith.constant 0 : index
    %c0_36 = arith.constant 0 : index
    %74 = vector.load %arg5[%c3_34, %c0_35, %c0_36] : memref<4x8x128xf32, #tpu.memory_space<vmem>>, vector<1x8x128xf32>
    %75 = vector.shape_cast %74 : vector<1x8x128xf32> to vector<8x128xf32>
    %76 = vector.shape_cast %73 : vector<8x128xf32> to vector<1x8x128xf32>
    tpu.vector_store %arg5[%c3_34, %c0_35, %c0_36], %76 {strides = array<i32>} : memref<4x8x128xf32, #tpu.memory_space<vmem>>, vector<1x8x128xf32>,
    %c0_i32_37 = arith.constant 0 : i32
    %77 = arith.cmpi eq, %arg1, %c0_i32_37 : i32
    %78 = arith.extui %77 : i1 to i32
    %c0_i32_38 = arith.constant 0 : i32
    %79 = arith.cmpi ne, %78, %c0_i32_38 : i32
    scf.if %79 {
      %c0_39 = arith.constant 0 : index
      %c0_40 = arith.constant 0 : index
      %c0_41 = arith.constant 0 : index
      %80 = vector.load %arg5[%c0_39, %c0_40, %c0_41] : memref<4x8x128xf32, #tpu.memory_space<vmem>>, vector<4x8x128xf32>
      %c0_42 = arith.constant 0 : index
      %c0_43 = arith.constant 0 : index
      %c0_44 = arith.constant 0 : index
      %c0_45 = arith.constant 0 : index
      %81 = vector.load %arg4[%c0_42, %c0_43, %c0_44, %c0_45] : memref<1x4x8x128xf32, #tpu.memory_space<vmem>>, vector<1x4x8x128xf32>
      %82 = vector.shape_cast %81 : vector<1x4x8x128xf32> to vector<4x8x128xf32>
      %83 = vector.shape_cast %80 : vector<4x8x128xf32> to vector<1x4x8x128xf32>
      tpu.vector_store %arg4[%c0_42, %c0_43, %c0_44, %c0_45], %83 {strides = array<i32>} : memref<1x4x8x128xf32, #tpu.memory_space<vmem>>, vector<1x4x8x128xf32>,
    } else {
    }
    return
  }
  func.func @transform_0(%arg0: i32, %arg1: i32) -> (i32, i32) {
    %c1_i32 = arith.constant 1 : i32
    %0 = arith.muli %arg0, %c1_i32 : i32
    %1 = arith.addi %0, %arg1 : i32
    %c0_i32 = arith.constant 0 : i32
    %2 = arith.minsi %1, %c0_i32 : i32
    %c0_i32_0 = arith.constant 0 : i32
    %c0_i32_1 = arith.constant 0 : i32
    return %2, %c0_i32_0 : i32, i32
  }
  func.func @transform_1(%arg0: i32, %arg1: i32) -> (i32, i32) {
    %c1_i32 = arith.constant 1 : i32
    %0 = arith.muli %arg0, %c1_i32 : i32
    %1 = arith.addi %0, %arg1 : i32
    %c0_i32 = arith.constant 0 : i32
    %2 = arith.minsi %1, %c0_i32 : i32
    %c0_i32_0 = arith.constant 0 : i32
    %c0_i32_1 = arith.constant 0 : i32
    return %2, %c0_i32_0 : i32, i32
  }
  func.func @transform_2(%arg0: i32, %arg1: i32) -> (i32, i32, i32, i32) {
    %c0_i32 = arith.constant 0 : i32
    %c0_i32_0 = arith.constant 0 : i32
    %c0_i32_1 = arith.constant 0 : i32
    %c0_i32_2 = arith.constant 0 : i32
    return %arg0, %c0_i32, %c0_i32_0, %c0_i32_1 : i32, i32, i32, i32
  }
}

</mosaic_0001>

<bundles_post_ra>
// kernel: _joint_focal_loss_impl.1
= control target key start
LH: loop header
LB: loop body
LE: loop exit
PB: predicated region body
PF: predicated region fallthrough
CT: control target
= control target key end

     0   :  { %s264_s0 = inlined_call_operand.vmem [shape: f32[16,128], index: 0, kind: input, shape index: {}]   ;;  %s265_s1 = inlined_call_operand.vmem [shape: f32[16,128], index: 1, kind: input, shape index: {}]   ;;  %s266_s2 = inlined_call_operand.vmem [shape: f32[1,4,8,128], index: 2, kind: output, shape index: {}]  }
   0x1   :  { %v83_v0 = vld [vmem:[%s264_s0] sm:$0xff]  ;;  %v84_v1 = vld [vmem:[%s264_s0 + $0x8] sm:$0xff] }
   0x2   :  { %v203_v2 = vclamps-f32 %v83_v0, 50.0  ;;  %v204_v3 = vclamps-f32 %v84_v1, 50.0  ;;  %v85_v8 = vld [vmem:[%s265_s1] sm:$0xff]  ;;  %v244_v9 = vld [vmem:[%s265_s1 + $0x8] sm:$0xff] }
   0x3   :  { %v157_v10 = vadd.f32 %v244_v9, %v85_v8  ;;  %v143_v27 = vsub.f32 1.0, %v85_v8  ;;  %v144_v28 = vsub.f32 1.0, %v244_v9 }
   0x4   :  { %v91_v4 = vmul.f32 -0.5, %v203_v2  ;;  %v92_v5 = vmul.f32 -0.5, %v204_v3  ;;  %v131_v20 = vsub.f32 0.0, %v203_v2  ;;  %v132_v23 = vsub.f32 0.0, %v204_v3 }
   0x5   :  { %185 = vst [vmem:[%s266_s2 + $0x10] sm:$0xff] %v157_v10 }
   0x6   :  { %v93_v6 = vmul.f32 1.442695, %v91_v4  ;;  %v95_v7 = vmul.f32 1.442695, %v92_v5 }
   0x8   :  { %205 = vpow2.f32 %v93_v6 }
   0x9   :  { %207 = vpow2.f32 %v95_v7 }
   0xe   :  { %v206_v11 = vpop.eup %205 }
   0xf   :  { %v208_v12 = vpop.eup %207  ;;  %v97_v13 = vmul.f32 %v206_v11, %v206_v11 }
  0x10   :  { %v98_v14 = vmul.f32 %v208_v12, %v208_v12 }
  0x11   :  { %v99_v15 = vadd.f32 1.0, %v97_v13 }
  0x12   :  { %v100_v16 = vadd.f32 1.0, %v98_v14 }
  0x13   :  { %209 = vrsqrt.f32 %v99_v15  ;;  %vm107_vm0 = vweird.f32 %v99_v15 }
  0x14   :  { %211 = vrsqrt.f32 %v100_v16  ;;  %vm117_vm1 = vweird.f32 %v100_v16 }
  0x15   :  { %213 = vlog2.f32 %v99_v15 }
  0x16   :  { %215 = vlog2.f32 %v100_v16 }
  0x19   :  { %v210_v17 = vpop.eup %209 }
  0x1a   :  { %v212_v18 = vpop.eup %211  ;;  %v102_v19 = vmul.f32 %v210_v17, %v99_v15  ;;  %vm108_vm2 = vweird.f32 %v210_v17 }
  0x1b   :  { %v214_v21 = vpop.eup %213  ;;  %v112_v22 = vmul.f32 %v212_v18, %v100_v16  ;;  %vm118_vm3 = vweird.f32 %v212_v18  ;;  %vm109_vm4 = vmor %vm107_vm0, %vm108_vm2 }
  0x1c   :  { %v216_v24 = vpop.eup %215  ;;  %v103_v25 = vmul.f32 %v210_v17, %v102_v19  ;;  %v124_v26 = vmul.f32 0.6931472, %v214_v21  ;;  %vm119_vm5 = vmor %vm117_vm1, %vm118_vm3 }
  0x1d   :  { %v113_v29 = vmul.f32 %v212_v18, %v112_v22  ;;  %v126_v30 = vmul.f32 0.6931472, %v216_v24 }
  0x1e   :  { %v104_v31 = vmul.f32 0.5, %v103_v25  ;;  %v127_v32 = vsub.f32 0.0, %v124_v26  ;;  %v133_v33 = vsub.f32 %v131_v20, %v124_v26 }
  0x1f   :  { %v114_v34 = vmul.f32 0.5, %v113_v29  ;;  %v128_v35 = vsub.f32 0.0, %v126_v30  ;;  %v134_v36 = vsub.f32 %v132_v23, %v126_v30 }
  0x20   :  { %v105_v37 = vsub.f32 1.5, %v104_v31  ;;  %v129_v38 = vmax.f32 %v127_v32, -16.118095  ;;  %v135_v39 = vmax.f32 %v133_v33, -16.118095 }
  0x21   :  { %v115_v40 = vsub.f32 1.5, %v114_v34  ;;  %v130_v41 = vmax.f32 %v128_v35, -16.118095  ;;  %v136_v42 = vmax.f32 %v134_v36, -16.118095 }
  0x22   :  { %v106_v43 = vmul.f32 %v210_v17, %v105_v37  ;;  %v145_v44 = vmul.f32 %v143_v27, %v135_v39  ;;  %v137_v46 = vmul.f32 %v129_v38, %v85_v8 }
  0x23   :  { %v116_v45 = vmul.f32 %v212_v18, %v115_v40  ;;  %v146_v47 = vmul.f32 %v144_v28, %v136_v42  ;;  %v138_v49 = vmul.f32 %v130_v41, %v244_v9 }
  0x24   :  { %v110_v48 = vsel %vm109_vm4, %v210_v17, %v106_v43 }
  0x25   :  { %v120_v50 = vsel %vm119_vm5, %v212_v18, %v116_v45  ;;  %v139_v51 = vmul.f32 %v206_v11, %v110_v48  ;;  %v147_v52 = vmul.f32 %v145_v44, %v110_v48  ;;  %v121_v53 = vmul.f32 %v110_v48, %v110_v48 }
  0x26   :  { %v140_v54 = vmul.f32 %v208_v12, %v120_v50  ;;  %v148_v55 = vmul.f32 %v146_v47, %v120_v50  ;;  %v122_v56 = vmul.f32 %v120_v50, %v120_v50 }
  0x27   :  { %v141_v57 = vmul.f32 %v139_v51, %v137_v46  ;;  %v151_v58 = vmul.f32 %v121_v53, %v85_v8 }
  0x28   :  { %v142_v59 = vmul.f32 %v140_v54, %v138_v49  ;;  %v155_v60 = vadd.f32 %v122_v56, %v121_v53  ;;  %v152_v61 = vmul.f32 %v122_v56, %v244_v9 }
  0x29   :  { %v149_v62 = vadd.f32 %v147_v52, %v141_v57 }
  0x2a   :  { %v150_v63 = vadd.f32 %v148_v55, %v142_v59  ;;  %184 = vst [vmem:[%s266_s2 + $0x8] sm:$0xff] %v155_v60  ;;  %v159_v0 = vadd.f32 %v152_v61, %v151_v58 }
  0x2c   :  { %v153_v1 = vadd.f32 %v150_v63, %v149_v62  ;;  %186 = vst [vmem:[%s266_s2 + $0x18] sm:$0xff] %v159_v0 }
  0x2e   :  { %183 = vst [vmem:[%s266_s2] sm:$0xff] %v153_v1 }

</bundles_post_ra>
